<compile_context>
chip_gen: v6e
topology: v6e:2x2x1
jax: 0.10.0
libtpu: 0.0.40
codegen_flags: <defaults>
</compile_context>

<pallas_src>
import jax
import jax.numpy as jnp
from jax.experimental import pallas as pl
from jax.experimental.pallas import tpu as pltpu

KSIZE = 7
PAD = 3


def sa_kernel(x_ref, band_ref, b_ref, out_ref, pad_ref, max_ref, sum_ref):
    # x_ref   : (1, Ct, H, W)  VMEM  input channel tile
    # band_ref: (2, 7, W, W)   VMEM  banded conv weights [max-plane, mean-plane]
    #                                (mean-plane pre-scaled by 1/C host-side)
    # b_ref   : (1,)           SMEM  conv bias
    # out_ref : (1, 1, H, W)   VMEM  output (block resident across the C axis)
    # pad_ref : (2, H+6, W)    VMEM  row-halo-padded max / sum planes
    # max_ref : (H, W) f32     VMEM  running channel max
    # sum_ref : (H, W) f32     VMEM  running channel sum
    c_idx = pl.program_id(1)
    ct = x_ref.shape[1]
    h, w = x_ref.shape[2], x_ref.shape[3]

    # ---- fused single-pass channel reduction over this C tile -------------
    first = x_ref[0, 0].astype(jnp.float32)

    def body(c, carry):
        m, s = carry
        plane = x_ref[0, c].astype(jnp.float32)
        return jnp.maximum(m, plane), s + plane

    m_tile, s_tile = jax.lax.fori_loop(1, ct, body, (first, first))

    @pl.when(c_idx == 0)
    def _():
        max_ref[...] = m_tile
        sum_ref[...] = s_tile

    @pl.when(c_idx != 0)
    def _():
        max_ref[...] = jnp.maximum(max_ref[...], m_tile)
        sum_ref[...] = sum_ref[...] + s_tile

    # ---- finalize: banded MXU conv + bias + sigmoid ------------------------
    @pl.when(c_idx == pl.num_programs(1) - 1)
    def _():
        zero_rows = jnp.zeros((PAD, w), jnp.float32)
        # Row halos only (kx/lane padding is folded into the band matrices);
        # all stores here are lane-aligned at column 0.
        pad_ref[0, 0:PAD, :] = zero_rows
        pad_ref[1, 0:PAD, :] = zero_rows
        pad_ref[0, PAD + h:PAD + h + PAD, :] = zero_rows
        pad_ref[1, PAD + h:PAD + h + PAD, :] = zero_rows
        pad_ref[0, PAD:PAD + h, :] = max_ref[...]
        pad_ref[1, PAD:PAD + h, :] = sum_ref[...]

        # out = sum_ky rowpad_plane[ky:ky+H, :] @ band[plane, ky]
        # Two independent accumulator chains (max-plane / mean-plane).
        acc_m = jnp.dot(pad_ref[0, 0:h, :], band_ref[0, 0],
                        preferred_element_type=jnp.float32)
        acc_a = jnp.dot(pad_ref[1, 0:h, :], band_ref[1, 0],
                        preferred_element_type=jnp.float32)
        for ky in range(1, KSIZE):
            acc_m = acc_m + jnp.dot(pad_ref[0, ky:ky + h, :], band_ref[0, ky],
                                    preferred_element_type=jnp.float32)
            acc_a = acc_a + jnp.dot(pad_ref[1, ky:ky + h, :], band_ref[1, ky],
                                    preferred_element_type=jnp.float32)

        sa = acc_m + acc_a + b_ref[0]
        out_ref[0, 0] = jax.nn.sigmoid(sa).astype(out_ref.dtype)


def build_band_matrices(conv_w, width, num_channels):
    """(1,2,7,7) OIHW conv weight -> (2, 7, W, W) f32 banded matrices.

    bands[p, ky, j, x] = w[p, ky, j - x + PAD] if |j - x| <= PAD else 0, so
    cross-correlation with padding=3 becomes, per plane,
        out = sum_ky rowpad_plane[ky:ky+H, :] @ bands[p, ky].
    The mean-plane (p=1) bands are pre-scaled by 1/C so the kernel can feed
    the raw channel sum directly.
    """
    w = conv_w[0].astype(jnp.float32)                       # (2, 7, 7)
    j = jnp.arange(width)[:, None]
    x = jnp.arange(width)[None, :]
    d = j - x + PAD                                         # tap index along kx
    valid = (d >= 0) & (d < KSIZE)
    d_c = jnp.clip(d, 0, KSIZE - 1)
    bands = jnp.where(valid[None, None], w[:, :, d_c], 0.0)  # (2, 7, W, W)
    return bands.at[1].multiply(1.0 / num_channels)


def sa_pallas(x, conv_w, conv_b, *, c_tile=None):
    B, C, H, W = x.shape
    itemsize = x.dtype.itemsize

    if c_tile is None:
        # Keep the x block around <= 4 MiB so double-buffered blocks + scratch
        # stay well inside v7x's 64 MiB physical VMEM even at production C,H,W.
        plane_bytes = max(1, H * W * itemsize)
        c_tile = max(1, min(C, (4 * 1024 * 1024) // plane_bytes))
    c_tile = max(1, min(c_tile, C))
    while C % c_tile != 0:
        c_tile -= 1
    num_c = C // c_tile

    bands = build_band_matrices(conv_w, W, C)               # (2, 7, W, W) f32
    b_flat = conv_b.reshape(-1).astype(jnp.float32)         # (1,)

    # VMEM budget from actual sizes (double-buffered blocks + resident bands
    # + scratch), with 2x headroom for (8,128) layout padding.
    x_block = c_tile * H * W * itemsize
    out_block = H * W * itemsize
    band_bytes = 2 * KSIZE * W * W * 4
    scratch_bytes = (2 * (H + 2 * PAD) * W + 2 * H * W) * 4
    need = 2 * (x_block + out_block + band_bytes) + scratch_bytes
    vmem_limit = int(min(100 * 1024 * 1024, max(32 * 1024 * 1024, 2 * need)))

    return pl.pallas_call(
        sa_kernel,
        out_shape=jax.ShapeDtypeStruct((B, 1, H, W), x.dtype),
        grid_spec=pltpu.PrefetchScalarGridSpec(
            num_scalar_prefetch=0,
            grid=(B, num_c),                         # C (reduction) axis last
            in_specs=[
                # last two block dims equal the full array dims -> legal,
                # contiguous HBM DMA per (batch, C-tile) step.
                pl.BlockSpec((1, c_tile, H, W), lambda b, c: (b, c, 0, 0)),
                # Band matrices: constant block index -> fetched once, resident.
                pl.BlockSpec((2, KSIZE, W, W), lambda b, c: (0, 0, 0, 0)),
                pl.BlockSpec(memory_space=pltpu.MemorySpace.SMEM),
            ],
            out_specs=pl.BlockSpec((1, 1, H, W), lambda b, c: (b, 0, 0, 0)),
            scratch_shapes=[
                pltpu.VMEM((2, H + 2 * PAD, W), jnp.float32),   # row-padded planes
                pltpu.VMEM((H, W), jnp.float32),                # running max
                pltpu.VMEM((H, W), jnp.float32),                # running sum
            ],
        ),
        compiler_params=pltpu.CompilerParams(
            dimension_semantics=("parallel", "arbitrary"),
            vmem_limit_bytes=vmem_limit,
        ),
    )(x, bands, b_flat)


def sa_reference(x, conv_w, conv_b):
    # Pure-JAX reference of the PyTorch SA.forward (exact-f32 conv).
    avca = jnp.mean(x, axis=1, keepdims=True)
    maca = jnp.max(x, axis=1, keepdims=True)
    com = jnp.concatenate([maca, avca], axis=1)              # (B, 2, H, W)
    sa = jax.lax.conv_general_dilated(
        com, conv_w, window_strides=(1, 1),
        padding=[(PAD, PAD), (PAD, PAD)],
        dimension_numbers=("NCHW", "OIHW", "NCHW"),
        precision=jax.lax.Precision.HIGHEST)
    sa = sa + conv_b[None, :, None, None]
    return jax.nn.sigmoid(sa)


if __name__ == "__main__":
    key = jax.random.PRNGKey(0)
    k1, k2, k3 = jax.random.split(key, 3)

    B, C, H, W = 2, 4, 16, 16
    x = jax.random.normal(k1, (B, C, H, W), dtype=jnp.float32)

    # Deterministic synthetic nn.Conv2d(2, 1, 7, padding=3) parameters.
    conv_w = 0.05 * jax.random.normal(k2, (1, 2, KSIZE, KSIZE), dtype=jnp.float32)
    conv_b = 0.01 * jax.random.normal(k3, (1,), dtype=jnp.float32)

    ref = sa_reference(x, conv_w, conv_b)

    # Exercise both the multi-step C-reduction path (c_tile=2 -> grid (2,2))
    # and the single-step path (default c_tile covers all of C).
    out_tiled = jax.block_until_ready(sa_pallas(x, conv_w, conv_b, c_tile=2))
    out_full = jax.block_until_ready(sa_pallas(x, conv_w, conv_b))

    assert out_tiled.shape == (B, 1, H, W)
    assert out_full.shape == (B, 1, H, W)
    # Tolerance sized for the MXU's reduced-pass f32 matmul mode in the worst
    # case (reference conv is exact f32); a structural bug would be O(1e-1).
    assert jnp.allclose(out_tiled, ref, atol=2e-3, rtol=2e-3)
    assert jnp.allclose(out_full, ref, atol=2e-3, rtol=2e-3)

    print("KERNEL_OK")
</pallas_src>

<mosaic_0001>
module attributes {stable_mosaic.version = 11 : i64} {
  func.func @sa_kernel(%arg0: i32, %arg1: i32, %arg2: memref<1x2x16x16xf32, #tpu.memory_space<vmem>>, %arg3: memref<2x7x16x16xf32, #tpu.memory_space<vmem>>, %arg4: memref<1xf32, #tpu.memory_space<smem>>, %arg5: memref<1x1x16x16xf32, #tpu.memory_space<vmem>>, %arg6: memref<2x22x16xf32, #tpu.memory_space<vmem>>, %arg7: memref<16x16xf32, #tpu.memory_space<vmem>>, %arg8: memref<16x16xf32, #tpu.memory_space<vmem>>) attributes {dimension_semantics = [#tpu.dimension_semantics<parallel>, #tpu.dimension_semantics<arbitrary>], iteration_bounds = array<i64: 2, 2>, scalar_prefetch = 0 : i64, scratch_operands = 3 : i64, tpu.core_type = #tpu.core_type<tc>, window_params = [{transform_indices = @transform_0, window_bounds = array<i64: 1, 2, 16, 16>}, {pipeline_mode = #tpu.pipeline_mode<synchronous>, transform_indices = @transform_1, window_bounds = array<i64: 2, 7, 16, 16>}, {transform_indices = @transform_2, window_bounds = array<i64: 1>}, {transform_indices = @transform_3, window_bounds = array<i64: 1, 1, 16, 16>}]} {
    %c0 = arith.constant 0 : index
    %c0_0 = arith.constant 0 : index
    %c0_1 = arith.constant 0 : index
    %c0_2 = arith.constant 0 : index
    %0 = vector.load %arg2[%c0, %c0_0, %c0_1, %c0_2] : memref<1x2x16x16xf32, #tpu.memory_space<vmem>>, vector<1x1x16x16xf32>
    %1 = vector.shape_cast %0 : vector<1x1x16x16xf32> to vector<16x16xf32>
    %c1_i32 = arith.constant 1 : i32
    %c0_3 = arith.constant 0 : index
    %2 = arith.index_cast %c1_i32 : i32 to index
    %c0_4 = arith.constant 0 : index
    %c0_5 = arith.constant 0 : index
    %3 = vector.load %arg2[%c0_3, %2, %c0_4, %c0_5] : memref<1x2x16x16xf32, #tpu.memory_space<vmem>>, vector<1x1x16x16xf32>
    %4 = vector.shape_cast %3 : vector<1x1x16x16xf32> to vector<16x16xf32>
    %5 = arith.maximumf %1, %4 : vector<16x16xf32>
    %6 = arith.addf %1, %4 : vector<16x16xf32>
    %c1_i32_6 = arith.constant 1 : i32
    %c0_i32 = arith.constant 0 : i32
    %7 = arith.cmpi eq, %arg1, %c0_i32 : i32
    %8 = arith.extui %7 : i1 to i32
    %c0_i32_7 = arith.constant 0 : i32
    %9 = arith.cmpi ne, %8, %c0_i32_7 : i32
    scf.if %9 {
      %c0_12 = arith.constant 0 : index
      %c0_13 = arith.constant 0 : index
      %16 = vector.load %arg7[%c0_12, %c0_13] : memref<16x16xf32, #tpu.memory_space<vmem>>, vector<16x16xf32>
      tpu.vector_store %arg7[%c0_12, %c0_13], %5 {strides = array<i32>} : memref<16x16xf32, #tpu.memory_space<vmem>>, vector<16x16xf32>,
      %c0_14 = arith.constant 0 : index
      %c0_15 = arith.constant 0 : index
      %17 = vector.load %arg8[%c0_14, %c0_15] : memref<16x16xf32, #tpu.memory_space<vmem>>, vector<16x16xf32>
      tpu.vector_store %arg8[%c0_14, %c0_15], %6 {strides = array<i32>} : memref<16x16xf32, #tpu.memory_space<vmem>>, vector<16x16xf32>,
    } else {
    }
    %c0_i32_8 = arith.constant 0 : i32
    %10 = arith.cmpi ne, %arg1, %c0_i32_8 : i32
    %11 = arith.extui %10 : i1 to i32
    %c0_i32_9 = arith.constant 0 : i32
    %12 = arith.cmpi ne, %11, %c0_i32_9 : i32
    scf.if %12 {
      %c0_12 = arith.constant 0 : index
      %c0_13 = arith.constant 0 : index
      %16 = vector.load %arg7[%c0_12, %c0_13] : memref<16x16xf32, #tpu.memory_space<vmem>>, vector<16x16xf32>
      %17 = arith.maximumf %16, %5 : vector<16x16xf32>
      %c0_14 = arith.constant 0 : index
      %c0_15 = arith.constant 0 : index
      %18 = vector.load %arg7[%c0_14, %c0_15] : memref<16x16xf32, #tpu.memory_space<vmem>>, vector<16x16xf32>
      tpu.vector_store %arg7[%c0_14, %c0_15], %17 {strides = array<i32>} : memref<16x16xf32, #tpu.memory_space<vmem>>, vector<16x16xf32>,
      %c0_16 = arith.constant 0 : index
      %c0_17 = arith.constant 0 : index
      %19 = vector.load %arg8[%c0_16, %c0_17] : memref<16x16xf32, #tpu.memory_space<vmem>>, vector<16x16xf32>
      %20 = arith.addf %19, %6 : vector<16x16xf32>
      %c0_18 = arith.constant 0 : index
      %c0_19 = arith.constant 0 : index
      %21 = vector.load %arg8[%c0_18, %c0_19] : memref<16x16xf32, #tpu.memory_space<vmem>>, vector<16x16xf32>
      tpu.vector_store %arg8[%c0_18, %c0_19], %20 {strides = array<i32>} : memref<16x16xf32, #tpu.memory_space<vmem>>, vector<16x16xf32>,
    } else {
    }
    %c1_i32_10 = arith.constant 1 : i32
    %13 = arith.cmpi eq, %arg1, %c1_i32_10 : i32
    %14 = arith.extui %13 : i1 to i32
    %c0_i32_11 = arith.constant 0 : i32
    %15 = arith.cmpi ne, %14, %c0_i32_11 : i32
    scf.if %15 {
      %cst = arith.constant 0.000000e+00 : f32
      %16 = vector.broadcast %cst : f32 to vector<3x16xf32>
      %c0_12 = arith.constant 0 : index
      %c0_13 = arith.constant 0 : index
      %c0_14 = arith.constant 0 : index
      %17 = vector.load %arg6[%c0_12, %c0_13, %c0_14] : memref<2x22x16xf32, #tpu.memory_space<vmem>>, vector<1x3x16xf32>
      %18 = vector.shape_cast %17 : vector<1x3x16xf32> to vector<3x16xf32>
      %19 = vector.shape_cast %16 : vector<3x16xf32> to vector<1x3x16xf32>
      tpu.vector_store %arg6[%c0_12, %c0_13, %c0_14], %19 {strides = array<i32>} : memref<2x22x16xf32, #tpu.memory_space<vmem>>, vector<1x3x16xf32>,
      %c1 = arith.constant 1 : index
      %c0_15 = arith.constant 0 : index
      %c0_16 = arith.constant 0 : index
      %20 = vector.load %arg6[%c1, %c0_15, %c0_16] : memref<2x22x16xf32, #tpu.memory_space<vmem>>, vector<1x3x16xf32>
      %21 = vector.shape_cast %20 : vector<1x3x16xf32> to vector<3x16xf32>
      %22 = vector.shape_cast %16 : vector<3x16xf32> to vector<1x3x16xf32>
      tpu.vector_store %arg6[%c1, %c0_15, %c0_16], %22 {strides = array<i32>} : memref<2x22x16xf32, #tpu.memory_space<vmem>>, vector<1x3x16xf32>,
      %c0_17 = arith.constant 0 : index
      %c19 = arith.constant 19 : index
      %c0_18 = arith.constant 0 : index
      %23 = vector.load %arg6[%c0_17, %c19, %c0_18] : memref<2x22x16xf32, #tpu.memory_space<vmem>>, vector<1x3x16xf32>
      %24 = vector.shape_cast %23 : vector<1x3x16xf32> to vector<3x16xf32>
      %25 = vector.shape_cast %16 : vector<3x16xf32> to vector<1x3x16xf32>
      tpu.vector_store %arg6[%c0_17, %c19, %c0_18], %25 {strides = array<i32>} : memref<2x22x16xf32, #tpu.memory_space<vmem>>, vector<1x3x16xf32>,
      %c1_19 = arith.constant 1 : index
      %c19_20 = arith.constant 19 : index
      %c0_21 = arith.constant 0 : index
      %26 = vector.load %arg6[%c1_19, %c19_20, %c0_21] : memref<2x22x16xf32, #tpu.memory_space<vmem>>, vector<1x3x16xf32>
      %27 = vector.shape_cast %26 : vector<1x3x16xf32> to vector<3x16xf32>
      %28 = vector.shape_cast %16 : vector<3x16xf32> to vector<1x3x16xf32>
      tpu.vector_store %arg6[%c1_19, %c19_20, %c0_21], %28 {strides = array<i32>} : memref<2x22x16xf32, #tpu.memory_space<vmem>>, vector<1x3x16xf32>,
      %c0_22 = arith.constant 0 : index
      %c0_23 = arith.constant 0 : index
      %29 = vector.load %arg7[%c0_22, %c0_23] : memref<16x16xf32, #tpu.memory_space<vmem>>, vector<16x16xf32>
      %c0_24 = arith.constant 0 : index
      %c3 = arith.constant 3 : index
      %c0_25 = arith.constant 0 : index
      %30 = vector.load %arg6[%c0_24, %c3, %c0_25] : memref<2x22x16xf32, #tpu.memory_space<vmem>>, vector<1x16x16xf32>
      %31 = vector.shape_cast %30 : vector<1x16x16xf32> to vector<16x16xf32>
      %32 = vector.shape_cast %29 : vector<16x16xf32> to vector<1x16x16xf32>
      tpu.vector_store %arg6[%c0_24, %c3, %c0_25], %32 {strides = array<i32>} : memref<2x22x16xf32, #tpu.memory_space<vmem>>, vector<1x16x16xf32>,
      %c0_26 = arith.constant 0 : index
      %c0_27 = arith.constant 0 : index
      %33 = vector.load %arg8[%c0_26, %c0_27] : memref<16x16xf32, #tpu.memory_space<vmem>>, vector<16x16xf32>
      %c1_28 = arith.constant 1 : index
      %c3_29 = arith.constant 3 : index
      %c0_30 = arith.constant 0 : index
      %34 = vector.load %arg6[%c1_28, %c3_29, %c0_30] : memref<2x22x16xf32, #tpu.memory_space<vmem>>, vector<1x16x16xf32>
      %35 = vector.shape_cast %34 : vector<1x16x16xf32> to vector<16x16xf32>
      %36 = vector.shape_cast %33 : vector<16x16xf32> to vector<1x16x16xf32>
      tpu.vector_store %arg6[%c1_28, %c3_29, %c0_30], %36 {strides = array<i32>} : memref<2x22x16xf32, #tpu.memory_space<vmem>>, vector<1x16x16xf32>,
      %c0_31 = arith.constant 0 : index
      %c0_32 = arith.constant 0 : index
      %c0_33 = arith.constant 0 : index
      %37 = vector.load %arg6[%c0_31, %c0_32, %c0_33] : memref<2x22x16xf32, #tpu.memory_space<vmem>>, vector<1x16x16xf32>
      %38 = vector.shape_cast %37 : vector<1x16x16xf32> to vector<16x16xf32>
      %c0_34 = arith.constant 0 : index
      %c0_35 = arith.constant 0 : index
      %c0_36 = arith.constant 0 : index
      %c0_37 = arith.constant 0 : index
      %39 = vector.load %arg3[%c0_34, %c0_35, %c0_36, %c0_37] : memref<2x7x16x16xf32, #tpu.memory_space<vmem>>, vector<1x1x16x16xf32>
      %40 = vector.shape_cast %39 : vector<1x1x16x16xf32> to vector<16x16xf32>
      %cst_38 = arith.constant dense<0.000000e+00> : vector<16x16xf32>
      %41 = tpu.matmul %38, %40, %cst_38 {dimension_numbers = #tpu.dot_dimension_numbers<[1], [0], [0], [1], [0, 0, 1, 1], [], []>} : vector<16x16xf32>, vector<16x16xf32>, vector<16x16xf32> -> vector<16x16xf32>
      %c1_39 = arith.constant 1 : index
      %c0_40 = arith.constant 0 : index
      %c0_41 = arith.constant 0 : index
      %42 = vector.load %arg6[%c1_39, %c0_40, %c0_41] : memref<2x22x16xf32, #tpu.memory_space<vmem>>, vector<1x16x16xf32>
      %43 = vector.shape_cast %42 : vector<1x16x16xf32> to vector<16x16xf32>
      %c1_42 = arith.constant 1 : index
      %c0_43 = arith.constant 0 : index
      %c0_44 = arith.constant 0 : index
      %c0_45 = arith.constant 0 : index
      %44 = vector.load %arg3[%c1_42, %c0_43, %c0_44, %c0_45] : memref<2x7x16x16xf32, #tpu.memory_space<vmem>>, vector<1x1x16x16xf32>
      %45 = vector.shape_cast %44 : vector<1x1x16x16xf32> to vector<16x16xf32>
      %cst_46 = arith.constant dense<0.000000e+00> : vector<16x16xf32>
      %46 = tpu.matmul %43, %45, %cst_46 {dimension_numbers = #tpu.dot_dimension_numbers<[1], [0], [0], [1], [0, 0, 1, 1], [], []>} : vector<16x16xf32>, vector<16x16xf32>, vector<16x16xf32> -> vector<16x16xf32>
      %c0_47 = arith.constant 0 : index
      %c1_48 = arith.constant 1 : index
      %c0_49 = arith.constant 0 : index
      %47 = vector.load %arg6[%c0_47, %c1_48, %c0_49] : memref<2x22x16xf32, #tpu.memory_space<vmem>>, vector<1x16x16xf32>
      %48 = vector.shape_cast %47 : vector<1x16x16xf32> to vector<16x16xf32>
      %c0_50 = arith.constant 0 : index
      %c1_51 = arith.constant 1 : index
      %c0_52 = arith.constant 0 : index
      %c0_53 = arith.constant 0 : index
      %49 = vector.load %arg3[%c0_50, %c1_51, %c0_52, %c0_53] : memref<2x7x16x16xf32, #tpu.memory_space<vmem>>, vector<1x1x16x16xf32>
      %50 = vector.shape_cast %49 : vector<1x1x16x16xf32> to vector<16x16xf32>
      %cst_54 = arith.constant dense<0.000000e+00> : vector<16x16xf32>
      %51 = tpu.matmul %48, %50, %cst_54 {dimension_numbers = #tpu.dot_dimension_numbers<[1], [0], [0], [1], [0, 0, 1, 1], [], []>} : vector<16x16xf32>, vector<16x16xf32>, vector<16x16xf32> -> vector<16x16xf32>
      %52 = arith.addf %41, %51 : vector<16x16xf32>
      %c1_55 = arith.constant 1 : index
      %c1_56 = arith.constant 1 : index
      %c0_57 = arith.constant 0 : index
      %53 = vector.load %arg6[%c1_55, %c1_56, %c0_57] : memref<2x22x16xf32, #tpu.memory_space<vmem>>, vector<1x16x16xf32>
      %54 = vector.shape_cast %53 : vector<1x16x16xf32> to vector<16x16xf32>
      %c1_58 = arith.constant 1 : index
      %c1_59 = arith.constant 1 : index
      %c0_60 = arith.constant 0 : index
      %c0_61 = arith.constant 0 : index
      %55 = vector.load %arg3[%c1_58, %c1_59, %c0_60, %c0_61] : memref<2x7x16x16xf32, #tpu.memory_space<vmem>>, vector<1x1x16x16xf32>
      %56 = vector.shape_cast %55 : vector<1x1x16x16xf32> to vector<16x16xf32>
      %cst_62 = arith.constant dense<0.000000e+00> : vector<16x16xf32>
      %57 = tpu.matmul %54, %56, %cst_62 {dimension_numbers = #tpu.dot_dimension_numbers<[1], [0], [0], [1], [0, 0, 1, 1], [], []>} : vector<16x16xf32>, vector<16x16xf32>, vector<16x16xf32> -> vector<16x16xf32>
      %58 = arith.addf %46, %57 : vector<16x16xf32>
      %c0_63 = arith.constant 0 : index
      %c2 = arith.constant 2 : index
      %c0_64 = arith.constant 0 : index
      %59 = vector.load %arg6[%c0_63, %c2, %c0_64] : memref<2x22x16xf32, #tpu.memory_space<vmem>>, vector<1x16x16xf32>
      %60 = vector.shape_cast %59 : vector<1x16x16xf32> to vector<16x16xf32>
      %c0_65 = arith.constant 0 : index
      %c2_66 = arith.constant 2 : index
      %c0_67 = arith.constant 0 : index
      %c0_68 = arith.constant 0 : index
      %61 = vector.load %arg3[%c0_65, %c2_66, %c0_67, %c0_68] : memref<2x7x16x16xf32, #tpu.memory_space<vmem>>, vector<1x1x16x16xf32>
      %62 = vector.shape_cast %61 : vector<1x1x16x16xf32> to vector<16x16xf32>
      %cst_69 = arith.constant dense<0.000000e+00> : vector<16x16xf32>
      %63 = tpu.matmul %60, %62, %cst_69 {dimension_numbers = #tpu.dot_dimension_numbers<[1], [0], [0], [1], [0, 0, 1, 1], [], []>} : vector<16x16xf32>, vector<16x16xf32>, vector<16x16xf32> -> vector<16x16xf32>
      %64 = arith.addf %52, %63 : vector<16x16xf32>
      %c1_70 = arith.constant 1 : index
      %c2_71 = arith.constant 2 : index
      %c0_72 = arith.constant 0 : index
      %65 = vector.load %arg6[%c1_70, %c2_71, %c0_72] : memref<2x22x16xf32, #tpu.memory_space<vmem>>, vector<1x16x16xf32>
      %66 = vector.shape_cast %65 : vector<1x16x16xf32> to vector<16x16xf32>
      %c1_73 = arith.constant 1 : index
      %c2_74 = arith.constant 2 : index
      %c0_75 = arith.constant 0 : index
      %c0_76 = arith.constant 0 : index
      %67 = vector.load %arg3[%c1_73, %c2_74, %c0_75, %c0_76] : memref<2x7x16x16xf32, #tpu.memory_space<vmem>>, vector<1x1x16x16xf32>
      %68 = vector.shape_cast %67 : vector<1x1x16x16xf32> to vector<16x16xf32>
      %cst_77 = arith.constant dense<0.000000e+00> : vector<16x16xf32>
      %69 = tpu.matmul %66, %68, %cst_77 {dimension_numbers = #tpu.dot_dimension_numbers<[1], [0], [0], [1], [0, 0, 1, 1], [], []>} : vector<16x16xf32>, vector<16x16xf32>, vector<16x16xf32> -> vector<16x16xf32>
      %70 = arith.addf %58, %69 : vector<16x16xf32>
      %c0_78 = arith.constant 0 : index
      %c3_79 = arith.constant 3 : index
      %c0_80 = arith.constant 0 : index
      %71 = vector.load %arg6[%c0_78, %c3_79, %c0_80] : memref<2x22x16xf32, #tpu.memory_space<vmem>>, vector<1x16x16xf32>
      %72 = vector.shape_cast %71 : vector<1x16x16xf32> to vector<16x16xf32>
      %c0_81 = arith.constant 0 : index
      %c3_82 = arith.constant 3 : index
      %c0_83 = arith.constant 0 : index
      %c0_84 = arith.constant 0 : index
      %73 = vector.load %arg3[%c0_81, %c3_82, %c0_83, %c0_84] : memref<2x7x16x16xf32, #tpu.memory_space<vmem>>, vector<1x1x16x16xf32>
      %74 = vector.shape_cast %73 : vector<1x1x16x16xf32> to vector<16x16xf32>
      %cst_85 = arith.constant dense<0.000000e+00> : vector<16x16xf32>
      %75 = tpu.matmul %72, %74, %cst_85 {dimension_numbers = #tpu.dot_dimension_numbers<[1], [0], [0], [1], [0, 0, 1, 1], [], []>} : vector<16x16xf32>, vector<16x16xf32>, vector<16x16xf32> -> vector<16x16xf32>
      %76 = arith.addf %64, %75 : vector<16x16xf32>
      %c1_86 = arith.constant 1 : index
      %c3_87 = arith.constant 3 : index
      %c0_88 = arith.constant 0 : index
      %77 = vector.load %arg6[%c1_86, %c3_87, %c0_88] : memref<2x22x16xf32, #tpu.memory_space<vmem>>, vector<1x16x16xf32>
      %78 = vector.shape_cast %77 : vector<1x16x16xf32> to vector<16x16xf32>
      %c1_89 = arith.constant 1 : index
      %c3_90 = arith.constant 3 : index
      %c0_91 = arith.constant 0 : index
      %c0_92 = arith.constant 0 : index
      %79 = vector.load %arg3[%c1_89, %c3_90, %c0_91, %c0_92] : memref<2x7x16x16xf32, #tpu.memory_space<vmem>>, vector<1x1x16x16xf32>
      %80 = vector.shape_cast %79 : vector<1x1x16x16xf32> to vector<16x16xf32>
      %cst_93 = arith.constant dense<0.000000e+00> : vector<16x16xf32>
      %81 = tpu.matmul %78, %80, %cst_93 {dimension_numbers = #tpu.dot_dimension_numbers<[1], [0], [0], [1], [0, 0, 1, 1], [], []>} : vector<16x16xf32>, vector<16x16xf32>, vector<16x16xf32> -> vector<16x16xf32>
      %82 = arith.addf %70, %81 : vector<16x16xf32>
      %c0_94 = arith.constant 0 : index
      %c4 = arith.constant 4 : index
      %c0_95 = arith.constant 0 : index
      %83 = vector.load %arg6[%c0_94, %c4, %c0_95] : memref<2x22x16xf32, #tpu.memory_space<vmem>>, vector<1x16x16xf32>
      %84 = vector.shape_cast %83 : vector<1x16x16xf32> to vector<16x16xf32>
      %c0_96 = arith.constant 0 : index
      %c4_97 = arith.constant 4 : index
      %c0_98 = arith.constant 0 : index
      %c0_99 = arith.constant 0 : index
      %85 = vector.load %arg3[%c0_96, %c4_97, %c0_98, %c0_99] : memref<2x7x16x16xf32, #tpu.memory_space<vmem>>, vector<1x1x16x16xf32>
      %86 = vector.shape_cast %85 : vector<1x1x16x16xf32> to vector<16x16xf32>
      %cst_100 = arith.constant dense<0.000000e+00> : vector<16x16xf32>
      %87 = tpu.matmul %84, %86, %cst_100 {dimension_numbers = #tpu.dot_dimension_numbers<[1], [0], [0], [1], [0, 0, 1, 1], [], []>} : vector<16x16xf32>, vector<16x16xf32>, vector<16x16xf32> -> vector<16x16xf32>
      %88 = arith.addf %76, %87 : vector<16x16xf32>
      %c1_101 = arith.constant 1 : index
      %c4_102 = arith.constant 4 : index
      %c0_103 = arith.constant 0 : index
      %89 = vector.load %arg6[%c1_101, %c4_102, %c0_103] : memref<2x22x16xf32, #tpu.memory_space<vmem>>, vector<1x16x16xf32>
      %90 = vector.shape_cast %89 : vector<1x16x16xf32> to vector<16x16xf32>
      %c1_104 = arith.constant 1 : index
      %c4_105 = arith.constant 4 : index
      %c0_106 = arith.constant 0 : index
      %c0_107 = arith.constant 0 : index
      %91 = vector.load %arg3[%c1_104, %c4_105, %c0_106, %c0_107] : memref<2x7x16x16xf32, #tpu.memory_space<vmem>>, vector<1x1x16x16xf32>
      %92 = vector.shape_cast %91 : vector<1x1x16x16xf32> to vector<16x16xf32>
      %cst_108 = arith.constant dense<0.000000e+00> : vector<16x16xf32>
      %93 = tpu.matmul %90, %92, %cst_108 {dimension_numbers = #tpu.dot_dimension_numbers<[1], [0], [0], [1], [0, 0, 1, 1], [], []>} : vector<16x16xf32>, vector<16x16xf32>, vector<16x16xf32> -> vector<16x16xf32>
      %94 = arith.addf %82, %93 : vector<16x16xf32>
      %c0_109 = arith.constant 0 : index
      %c5 = arith.constant 5 : index
      %c0_110 = arith.constant 0 : index
      %95 = vector.load %arg6[%c0_109, %c5, %c0_110] : memref<2x22x16xf32, #tpu.memory_space<vmem>>, vector<1x16x16xf32>
      %96 = vector.shape_cast %95 : vector<1x16x16xf32> to vector<16x16xf32>
      %c0_111 = arith.constant 0 : index
      %c5_112 = arith.constant 5 : index
      %c0_113 = arith.constant 0 : index
      %c0_114 = arith.constant 0 : index
      %97 = vector.load %arg3[%c0_111, %c5_112, %c0_113, %c0_114] : memref<2x7x16x16xf32, #tpu.memory_space<vmem>>, vector<1x1x16x16xf32>
      %98 = vector.shape_cast %97 : vector<1x1x16x16xf32> to vector<16x16xf32>
      %cst_115 = arith.constant dense<0.000000e+00> : vector<16x16xf32>
      %99 = tpu.matmul %96, %98, %cst_115 {dimension_numbers = #tpu.dot_dimension_numbers<[1], [0], [0], [1], [0, 0, 1, 1], [], []>} : vector<16x16xf32>, vector<16x16xf32>, vector<16x16xf32> -> vector<16x16xf32>
      %100 = arith.addf %88, %99 : vector<16x16xf32>
      %c1_116 = arith.constant 1 : index
      %c5_117 = arith.constant 5 : index
      %c0_118 = arith.constant 0 : index
      %101 = vector.load %arg6[%c1_116, %c5_117, %c0_118] : memref<2x22x16xf32, #tpu.memory_space<vmem>>, vector<1x16x16xf32>
      %102 = vector.shape_cast %101 : vector<1x16x16xf32> to vector<16x16xf32>
      %c1_119 = arith.constant 1 : index
      %c5_120 = arith.constant 5 : index
      %c0_121 = arith.constant 0 : index
      %c0_122 = arith.constant 0 : index
      %103 = vector.load %arg3[%c1_119, %c5_120, %c0_121, %c0_122] : memref<2x7x16x16xf32, #tpu.memory_space<vmem>>, vector<1x1x16x16xf32>
      %104 = vector.shape_cast %103 : vector<1x1x16x16xf32> to vector<16x16xf32>
      %cst_123 = arith.constant dense<0.000000e+00> : vector<16x16xf32>
      %105 = tpu.matmul %102, %104, %cst_123 {dimension_numbers = #tpu.dot_dimension_numbers<[1], [0], [0], [1], [0, 0, 1, 1], [], []>} : vector<16x16xf32>, vector<16x16xf32>, vector<16x16xf32> -> vector<16x16xf32>
      %106 = arith.addf %94, %105 : vector<16x16xf32>
      %c0_124 = arith.constant 0 : index
      %c6 = arith.constant 6 : index
      %c0_125 = arith.constant 0 : index
      %107 = vector.load %arg6[%c0_124, %c6, %c0_125] : memref<2x22x16xf32, #tpu.memory_space<vmem>>, vector<1x16x16xf32>
      %108 = vector.shape_cast %107 : vector<1x16x16xf32> to vector<16x16xf32>
      %c0_126 = arith.constant 0 : index
      %c6_127 = arith.constant 6 : index
      %c0_128 = arith.constant 0 : index
      %c0_129 = arith.constant 0 : index
      %109 = vector.load %arg3[%c0_126, %c6_127, %c0_128, %c0_129] : memref<2x7x16x16xf32, #tpu.memory_space<vmem>>, vector<1x1x16x16xf32>
      %110 = vector.shape_cast %109 : vector<1x1x16x16xf32> to vector<16x16xf32>
      %cst_130 = arith.constant dense<0.000000e+00> : vector<16x16xf32>
      %111 = tpu.matmul %108, %110, %cst_130 {dimension_numbers = #tpu.dot_dimension_numbers<[1], [0], [0], [1], [0, 0, 1, 1], [], []>} : vector<16x16xf32>, vector<16x16xf32>, vector<16x16xf32> -> vector<16x16xf32>
      %112 = arith.addf %100, %111 : vector<16x16xf32>
      %c1_131 = arith.constant 1 : index
      %c6_132 = arith.constant 6 : index
      %c0_133 = arith.constant 0 : index
      %113 = vector.load %arg6[%c1_131, %c6_132, %c0_133] : memref<2x22x16xf32, #tpu.memory_space<vmem>>, vector<1x16x16xf32>
      %114 = vector.shape_cast %113 : vector<1x16x16xf32> to vector<16x16xf32>
      %c1_134 = arith.constant 1 : index
      %c6_135 = arith.constant 6 : index
      %c0_136 = arith.constant 0 : index
      %c0_137 = arith.constant 0 : index
      %115 = vector.load %arg3[%c1_134, %c6_135, %c0_136, %c0_137] : memref<2x7x16x16xf32, #tpu.memory_space<vmem>>, vector<1x1x16x16xf32>
      %116 = vector.shape_cast %115 : vector<1x1x16x16xf32> to vector<16x16xf32>
      %cst_138 = arith.constant dense<0.000000e+00> : vector<16x16xf32>
      %117 = tpu.matmul %114, %116, %cst_138 {dimension_numbers = #tpu.dot_dimension_numbers<[1], [0], [0], [1], [0, 0, 1, 1], [], []>} : vector<16x16xf32>, vector<16x16xf32>, vector<16x16xf32> -> vector<16x16xf32>
      %118 = arith.addf %106, %117 : vector<16x16xf32>
      %119 = arith.addf %112, %118 : vector<16x16xf32>
      %c0_139 = arith.constant 0 : index
      %120 = memref.load %arg4[%c0_139] : memref<1xf32, #tpu.memory_space<smem>>
      %121 = vector.broadcast %120 : f32 to vector<16x16xf32>
      %122 = arith.addf %119, %121 : vector<16x16xf32>
      %123 = arith.negf %122 : vector<16x16xf32>
      %124 = math.exp %123 : vector<16x16xf32>
      %cst_140 = arith.constant 1.000000e+00 : f32
      %125 = vector.broadcast %cst_140 : f32 to vector<16x16xf32>
      %126 = arith.addf %125, %124 : vector<16x16xf32>
      %127 = arith.divf %125, %126 : vector<16x16xf32>
      %c0_141 = arith.constant 0 : index
      %c0_142 = arith.constant 0 : index
      %c0_143 = arith.constant 0 : index
      %c0_144 = arith.constant 0 : index
      %128 = vector.load %arg5[%c0_141, %c0_142, %c0_143, %c0_144] : memref<1x1x16x16xf32, #tpu.memory_space<vmem>>, vector<1x1x16x16xf32>
      %129 = vector.shape_cast %128 : vector<1x1x16x16xf32> to vector<16x16xf32>
      %130 = vector.shape_cast %127 : vector<16x16xf32> to vector<1x1x16x16xf32>
      tpu.vector_store %arg5[%c0_141, %c0_142, %c0_143, %c0_144], %130 {strides = array<i32>} : memref<1x1x16x16xf32, #tpu.memory_space<vmem>>, vector<1x1x16x16xf32>,
    } else {
    }
    return
  }
  func.func @transform_0(%arg0: i32, %arg1: i32) -> (i32, i32, i32, i32) {
    %c0_i32 = arith.constant 0 : i32
    %c0_i32_0 = arith.constant 0 : i32
    %c0_i32_1 = arith.constant 0 : i32
    return %arg0, %arg1, %c0_i32, %c0_i32_0 : i32, i32, i32, i32
  }
  func.func @transform_1(%arg0: i32, %arg1: i32) -> (i32, i32, i32, i32) {
    %c0_i32 = arith.constant 0 : i32
    %c0_i32_0 = arith.constant 0 : i32
    %c0_i32_1 = arith.constant 0 : i32
    %c0_i32_2 = arith.constant 0 : i32
    %c0_i32_3 = arith.constant 0 : i32
    return %c0_i32, %c0_i32_0, %c0_i32_1, %c0_i32_2 : i32, i32, i32, i32
  }
  func.func @transform_2(%arg0: i32, %arg1: i32) -> i32 {
    %c0_i32 = arith.constant 0 : i32
    %c0_i32_0 = arith.constant 0 : i32
    return %c0_i32 : i32
  }
  func.func @transform_3(%arg0: i32, %arg1: i32) -> (i32, i32, i32, i32) {
    %c0_i32 = arith.constant 0 : i32
    %c0_i32_0 = arith.constant 0 : i32
    %c0_i32_1 = arith.constant 0 : i32
    %c0_i32_2 = arith.constant 0 : i32
    return %arg0, %c0_i32, %c0_i32_0, %c0_i32_1 : i32, i32, i32, i32
  }
}

</mosaic_0001>

<bundles_post_ra>
// kernel: tpu_custom_call.1
= control target key start
LH: loop header
LB: loop body
LE: loop exit
PB: predicated region body
PF: predicated region fallthrough
CT: control target
= control target key end

     0   :  { %s2451_s0 = inlined_call_operand.hbm [shape: f32[2,4,16,16], index: 0, kind: input, shape index: {}]   ;;  %s2452_s1 = inlined_call_operand.hbm [shape: f32[2,7,16,16], index: 1, kind: input, shape index: {}]   ;;  %s2453_s2 = inlined_call_operand.<no memory space> [shape: f32[1], index: 2, kind: input, shape index: {}]   ;;  %s2454_s3 = inlined_call_operand.hbm [shape: f32[2,1,16,16], index: 3, kind: output, shape index: {}]  }
   0x1   :  { %2464 = sst [smem:[#allocation19_spill]] %s2452_s1 }
   0x2   :  { %2465 = sst [smem:[#allocation20_spill]] %s2454_s3 }
   0x3   :  { %8 = sst [smem:[#allocation5]] %s2453_s2 }
   0x4   :  { %9 = vsyncpa [#allocation7], 0 }
   0x5   :  { %11 = vsyncpa [#allocation7 + $0x1], 0 }
   0x6   :  { %12 = vsyncpa [#allocation10], 0 }
   0x7   :  { %13 = vsyncpa [#allocation8], 0 }
   0x8   :  { %15 = vsyncpa [#allocation8 + $0x1], 0  ;;  %s2178_s14 = smov 0   ;;  %s2180_s15 = smov 0  }
   0x9   :  { %s2182_s16 = smov 0   ;;  %s2184_s17 = smov 0  }
   0xa   :  { %s2186_s18 = smov 0   ;;  %s2188_s19 = smov 0  }
   0xb   :  { %s2190_s20 = smov 0   ;;  %s2192_s2 = smov 0  }
   0xc   :  { %s2194_s21 = smov 0   ;;  %s2196_s22 = smov 0  }
   0xd   :  { %s2198_s23 = smov 0  }
   0xe LB: > { %2466 = sst [smem:[#allocation15_spill]] %s2105_s14  ;;  %s1631_s24 = sadd.s32 4294967295, %s2145_s23   ;;  %s2145_s23 = sphi %s2198_s23, %s21_s23   ;;  %s2141_s22 = sphi %s2196_s22, %s2496_s22   ;;  %s2137_s21 = sphi %s2194_s21, %s2495_s21   ;;  %s2133_s2 = sphi %s2192_s2, %s2494_s2   ;;  %s2129_s20 = sphi %s2190_s20, %s2493_s20   ;;  %s2125_s19 = sphi %s2188_s19, %s2492_s19   ;;  %s2121_s18 = sphi %s2186_s18, %s2491_s18   ;;  %s2117_s17 = sphi %s2184_s17, %s2490_s17   ;;  %s2113_s16 = sphi %s2182_s16, %s2489_s16   ;;  %s2109_s15 = sphi %s2180_s15, %s2488_s15   ;;  %s2105_s14 = sphi %s2178_s14, %s2487_s14  }
   0xf   : > { %s1632_s25 = sadd.s32 4294967294, %s2145_s23   ;;  %p55_p0 = scmp.ne.s32.totalorder %s2121_s18, %s2117_s17 }
  0x10   : > { %p2234_p1 = scmp.eq.s32.totalorder %s1631_s24, 0  ;;  %s110_s27 = sadd.s32 1, %s2113_s16 }
  0x11   : > { %p120_p2 = scmp.ne.s32.totalorder %s2113_s16, %s2109_s15  ;;  %p121_p4 = scmp.eq.s32.totalorder %s1631_s24, 3 }
  0x12   : > { %p2243_p3 = por %p2234_p1, %p55_p0  ;;  %p126_p5 = scmp.ne.s32.totalorder %s2109_s15, %s2105_s14 }
  0x13   : > { %p127_p6 = scmp.eq.s32.totalorder %s1632_s25, 3  ;;  %p2249_p7 = por %p121_p4, %p120_p2 }
  0x14   : > { %p1633_p8 = scmp.ge.s32.totalorder %s2145_s23, 1  ;;  %p134_p10 = scmp.lt.s32.totalorder %s2145_s23, 5 }
  0x15   : > { %s2469_s29 = scalar_select %p2249_p7, 1, 0 }
  0x16   : > { %p2254_p9 = por %p127_p6, %p126_p5  ;;  %p2259_p11 = pnand %p1633_p8, %p134_p10 }
  0x17   : > { %2470 = sst [smem:[#allocation16_spill]] %s2469_s29  ;;  %s2147_s5 = smov [#allocation9]  }
  0x18   : > { %s2471_s30 = scalar_select %p2254_p9, 1, 0 }
  0x19   : > { %s146_s6 = sshll.u32 %s2147_s5, 4  ;;  %p1849_p12 = pneg %p2259_p11  ;;  %s147_s6 = int_to_ptr.vmem [resolvable:$true] %s146_s6 }
  0x1a   : > { %2472 = sst [smem:[#allocation17_spill]] %s2471_s30  ;;  %s1978_s7 = scalar_lea.vmem %s147_s6, 3584 }
  0x1b   : > { %p1850_p13 = pnand %p1849_p12, %p2234_p1  ;;  %p1979_p2 = scmp.ne.s32.totalorder %s147_s6, %s1978_s7 }
  0x1c   : > { %p1986_p6 = scmp.lt.s32.totalorder %s147_s6, %s147_s6  ;;  %p1987_p9 = scmp.lt.s32.totalorder %s1978_s7, %s1978_s7 }
  0x1d   : > { %p1969_p0 = pneg %p1850_p13 }
  0x1e   : > { %p1988_p7 = por %p1987_p9, %p1986_p6 }
  0x1f   : > { %p1981_p4 = pnand %p1979_p2, %p1969_p0 }
  0x21   : > { %p1982_p5 = pneg %p1981_p4 }
  0x23   : > { %p1989_p8 = pnand %p1988_p7, %p1982_p5 }
  0x25   : > { %1992 = shalt.err (!%p1989_p8)
}
  0x26   : > { %s2456_s8 = smov 128   ;;  %s2457_s9 = smov 8  }
  0x27   : > { %s2474_s1 = sld [smem:[#allocation19_spill]]  ;;  %s30_s12 = sadd.s32 1, %s2137_s21 }
  0x28   : > { %p31_p7 = scmp.ge.s32.totalorder %s30_s12, 2  ;;  %s33_s13 = sadd.s32 1, %s2141_s22 }
  0x29   : > { %s42_s17 = sadd.s32 1, %s2125_s19  ;;  %p49_p9 = scmp.ne.s32.totalorder %s2125_s19, %s2121_s18 }
  0x2a   : > { %s2498_s12 = smov (%p31_p7, %s30_s12), 0  ;;  %s2500_s13 = smov (!%p31_p7, %s33_s13), %s2141_s22 }
  0x2b   : > { %2475 = sst [smem:[#allocation18_spill]] %s2498_s12  ;;  %s38_s24 = ssub.s32 %s2137_s21, %s2498_s12 }
  0x2c   : > { %p50_p10 = scmp.eq.s32.totalorder %s2145_s23, 0  ;;  %p35_p12 = scmp.ge.s32.totalorder %s2500_s13, 2 }
  0x2d   : > { %1852 = dma.hbm_to_vmem [thread:$0]  (!%p1850_p13), %s2474_s1, 3584, %s147_s6, [#allocation10], %s2456_s8, %s2456_s8, %s2457_s9  }
  0x2e   : > { %p1862_p0 = scmp.lt.s32.totalorder %s2145_s23, 4  ;;  %p2285_p13 = por %p50_p10, %p49_p9 }
  0x2f   : > { %s163_s5 = sand.u32 1, %s2125_s19   ;;  %s2502_s13 = smov (%p35_p12, %s2500_s13), 0 }
  0x30   : > { %s1636_s6 = sshll.u32 %s163_s5, 5  ;;  %s37_s7 = ssub.s32 %s2141_s22, %s2502_s13 }
  0x31   : > { %s39_s10 = sor.u32 %s38_s24, %s37_s7  ;;  %p108_p2 = scmp.eq.s32.totalorder %s37_s7, 0 }
  0x32   : > { %p40_p4 = scmp.eq.s32.totalorder %s39_s10, 0  ;;  %s1685_s11 = sshll.u32 %s2137_s21, 2 }
  0x33   : > { %s2298_s8 = scalar_select %p108_p2, %s2113_s16, %s110_s27  }
  0x34   : > { %s2301_s9 = scalar_select %p40_p4, %s2125_s19, %s42_s17  }
  0x35   : > { %s1639_s1 = sshll.u32 %s2141_s22, 3  ;;  %s167_s12 = scalar_lea.vmem [#allocation6], %s1636_s6 }
  0x36   : > { %s177_s30 = sshll.u32 %s167_s12, 4  ;;  %s174_s14 = sadd.s32 %s1685_s11, %s1639_s1  ;;  %s178_s30 = int_to_ptr.vmem [resolvable:$true] %s177_s30 }
  0x37   : > { %s1640_s3 = sshll.u32 %s174_s14, 7  ;;  %p2308_p5 = pnand %p1862_p0, %p2285_p13 }
  0x38   : > { %s176_s27 = scalar_lea.hbm %s2451_s0, %s1640_s3  ;;  %s164_s10 = scalar_lea.sflag [#allocation7], %s163_s5 }
  0x39   : > { %p1995_p6 = pneg %p2308_p5  ;;  %s2006_s17 = scalar_lea.vmem %s178_s30, 512 }
  0x3a   : > { %p2007_p8 = scmp.ne.s32.totalorder %s178_s30, %s2006_s17  ;;  %s2150_s1 = smov [#allocation6]  }
  0x3b   : > { %s2011_s14 = sshll.u32 %s2150_s1, 4  ;;  %s2012_s14 = int_to_ptr.vmem [resolvable:$false] %s2011_s14 }
  0x3c   : > { %p2009_p7 = pnand %p2007_p8, %p1995_p6  ;;  %s2013_s12 = scalar_lea.vmem %s2012_s14, 1024 }
  0x3d   : > { %p2014_p10 = scmp.lt.s32.totalorder %s178_s30, %s2012_s14  ;;  %p2015_p12 = scmp.lt.s32.totalorder %s2013_s12, %s2006_s17 }
  0x3e   : > { %p2010_p9 = pneg %p2009_p7 }
  0x3f   : > { %p2016_p0 = por %p2015_p12, %p2014_p10 }
  0x41   : > { %p2017_p13 = pnand %p2016_p0, %p2010_p9 }
  0x43   : > { %2020 = shalt.err (!%p2017_p13)
}
  0x44   : > { %s2478_s25 = smov 8   ;;  %s2479_s3 = smov 128  }
  0x45   : > { %1856 = dma.hbm_to_vmem [thread:$0]  (!%p2308_p5), %s176_s27, 512, %s178_s30, %s164_s10, %s2479_s3, %s2479_s3, %s2478_s25  }
  0x46   : > { %189 = sbr.rel (%p2259_p11) target bundleno = 416 (0x1a0), region = 32  ;;  %s191_s5 = sand.u32 (!%p2259_p11), 1, %s2121_s18  }
  0x47   : > { %s1642_s6 = sshll.u32 (!%p2259_p11), %s191_s5, 5  ;;  %s192_s11 = scalar_lea.sflag (!%p2259_p11), [#allocation7], %s191_s5 }
  0x48   : > { %s195_s24 = scalar_lea.vmem (!%p2259_p11), [#allocation6], %s1642_s6 }
  0x4b   : > { %2092 = dma.done.wait (%p2243_p3), %s192_s11, 512  }
  0x4c   : > { %2094 = vsyncadd (%p2243_p3), %s192_s11, 4294966784 }
  0x4d   : > { %2096 = dma.done.wait (%p2234_p1), [#allocation10], 3584  }
  0x4e   : > { %2098 = vsyncadd (%p2234_p1), [#allocation10], 4294963712  ;;  %s219_s29 = sand.u32 1, %s2109_s15   ;;  %v223_v0 = vld [vmem:[%s195_s24] sm:$0xff]  ;;  %v224_v1 = vld [vmem:[%s195_s24 + $0x8] sm:$0xff]  ;;  %p1647_p3 = scmp.ne.s32.totalorder %s2129_s20, 0 }
  0x4f   : > { %s1644_s30 = sshll.u32 %s219_s29, 4  ;;  %v1645_v2 = vld [vmem:[%s195_s24 + $0x10] sm:$0xff]  ;;  %v1646_v3 = vld [vmem:[%s195_s24 + $0x18] sm:$0xff] }
  0x50   : > { %v228_v4 = vmax.f32 %v223_v0, %v1645_v2  ;;  %v230_v5 = vadd.f32 %v1645_v2, %v223_v0  ;;  %v229_v6 = vmax.f32 %v224_v1, %v1646_v3  ;;  %v231_v7 = vadd.f32 %v1646_v3, %v224_v1  ;;  %s2336_s28 = scalar_lea.vmem [#allocation11], %s1644_s30  ;;  %235 = sbr.rel (%p1647_p3) target bundleno = 88 (0x58), region = 44 }
  0x55   : > { %vm236_vm0 = vcmask 130048  }
  0x56   : > { %237 = vst.msk [vmem:[#allocation3] sm:$0xff] %vm236_vm0, %v228_v4  ;;  %238 = vst.msk [vmem:[#allocation3 + $0x8] sm:$0xff] %vm236_vm0, %v229_v6 }
  0x57   : > { %239 = vst.msk [vmem:[#allocation4] sm:$0xff] %vm236_vm0, %v230_v5  ;;  %240 = vst.msk [vmem:[#allocation4 + $0x8] sm:$0xff] %vm236_vm0, %v231_v7 }
  0x58 PF: > { %p1648_p1 = scmp.eq.s32.totalorder %s2129_s20, 0 }
  0x5a   : > { %244 = sbr.rel (%p1648_p1) target bundleno = 100 (0x64), region = 48 }
  0x5f   : > { %v245_v8 = vld [vmem:[#allocation3] sm:$0xff]  ;;  %vm249_vm1 = vcmask 130048   ;;  %v246_v9 = vld [vmem:[#allocation3 + $0x8] sm:$0xff]  ;;  %v252_v10 = vld [vmem:[#allocation4] sm:$0xff] }
  0x60   : > { %v247_v11 = vmax.f32 %v245_v8, %v228_v4  ;;  %v248_v12 = vmax.f32 %v246_v9, %v229_v6  ;;  %v254_v13 = vadd.f32 %v252_v10, %v230_v5  ;;  %v253_v14 = vld [vmem:[#allocation4 + $0x8] sm:$0xff] }
  0x61   : > { %v255_v15 = vadd.f32 %v253_v14, %v231_v7 }
  0x62   : > { %250 = vst.msk [vmem:[#allocation3] sm:$0xff] %vm249_vm1, %v247_v11  ;;  %251 = vst.msk [vmem:[#allocation3 + $0x8] sm:$0xff] %vm249_vm1, %v248_v12 }
  0x63   : > { %256 = vst.msk [vmem:[#allocation4] sm:$0xff] %vm249_vm1, %v254_v13  ;;  %257 = vst.msk [vmem:[#allocation4 + $0x8] sm:$0xff] %vm249_vm1, %v255_v15 }
  0x64 PF: > { %p1649_p11 = scmp.ne.s32.totalorder %s2129_s20, 1 }
  0x65   : > { %s2373_s20 = sld [smem:[#allocation5]] (!%p1649_p11) }
  0x66   : > { %261 = sbr.rel (%p1649_p11) target bundleno = 389 (0x185), region = 52 }
  0x6b   : > { %v290_v16 = vld [vmem:[#allocation9 + $0x18] sm:$0xff]  ;;  %v280_v17 = vld [vmem:[#allocation9 + $0x8] sm:$0xff]  ;;  %v289_v18 = vld [vmem:[#allocation9 + $0x10] sm:$0xff]  ;;  %vm262_vm2 = vcmask 124928   ;;  %vm270_vm3 = vcmask 130048   ;;  %v2151_v20 = vmov 0.0  }
  0x6c   : > { %1743 = vmatprep.subr.mxu0 %v290_v16  ;;  %1750 = vmatprep.subr.mxu1 %v280_v17  ;;  %v279_v19 = vld [vmem:[#allocation9] sm:$0xff]  ;;  %263 = vst.msk [vmem:[#allocation2] sm:$0x7] %vm262_vm2, %v2151_v20  ;;  %265 = vst.msk [vmem:[#allocation2 + $0x18] sm:$0x7] %vm262_vm2, %v2151_v20  ;;  %v457_v22 = vld [vmem:[#allocation9 + $0x88] sm:$0xff] }
  0x6d   : > { %v268_v21 = vld [vmem:[#allocation3] sm:$0xff]  ;;  %266 = vst.msk [vmem:[#allocation2 + $0x13] sm:$0x7] %vm262_vm2, %v2151_v20  ;;  %267 = vst.msk [vmem:[#allocation2 + $0x2b] sm:$0x7] %vm262_vm2, %v2151_v20  ;;  %1744 = vmatpush3.msra.mxu0 %v290_v16  ;;  %1751 = vmatpush3.msra.mxu1 %v280_v17  ;;  %v285_v23 = vld [vmem:[#allocation9 + $0x78] sm:$0xff] }
  0x6e   : > { %271 = vst.msk [vmem:[#allocation2 + $0x3] sm:$0xff] %vm270_vm3, %v268_v21  ;;  %v269_v24 = vld [vmem:[#allocation3 + $0x8] sm:$0xff]  ;;  %1745 = vmatprep.subr.mxu0 %v289_v18  ;;  %1752 = vmatprep.subr.mxu1 %v279_v19  ;;  %v273_v25 = vld [vmem:[#allocation4] sm:$0xff]  ;;  %v274_v26 = vld [vmem:[#allocation4 + $0x8] sm:$0xff] }
  0x6f   : > { %272 = vst.msk [vmem:[#allocation2 + $0xb] sm:$0xff] %vm270_vm3, %v269_v24  ;;  %1746 = vmatpush3.msra.mxu0 %v289_v18  ;;  %1753 = vmatpush3.msra.mxu1 %v279_v19  ;;  %275 = vst.msk [vmem:[#allocation2 + $0x1b] sm:$0xff] %vm270_vm3, %v273_v25  ;;  %v456_v29 = vld [vmem:[#allocation9 + $0x80] sm:$0xff]  ;;  %v284_v32 = vld [vmem:[#allocation9 + $0x70] sm:$0xff] }
  0x70   : > { %1757 = vmatprep.subr.mxu0 %v457_v22  ;;  %1764 = vmatprep.subr.mxu1 %v285_v23  ;;  %276 = vst.msk [vmem:[#allocation2 + $0x23] sm:$0xff] %vm270_vm3, %v274_v26  ;;  %v624_v35 = vld [vmem:[#allocation9 + $0x28] sm:$0xff]  ;;  %v712_v36 = vld [vmem:[#allocation9 + $0x98] sm:$0xff]  ;;  %v623_v39 = vld [vmem:[#allocation9 + $0x20] sm:$0xff] }
  0x71   : > { %v711_v40 = vld [vmem:[#allocation9 + $0x90] sm:$0xff]  ;;  %v800_v43 = vld [vmem:[#allocation9 + $0x38] sm:$0xff]  ;;  %v888_v44 = vld [vmem:[#allocation9 + $0xa8] sm:$0xff] }
  0x72   : > { %v799_v47 = vld [vmem:[#allocation9 + $0x30] sm:$0xff]  ;;  %v887_v48 = vld [vmem:[#allocation9 + $0xa0] sm:$0xff]  ;;  %v976_v51 = vld [vmem:[#allocation9 + $0x48] sm:$0xff] }
  0x73   : > { %v1064_v52 = vld [vmem:[#allocation9 + $0xb8] sm:$0xff]  ;;  %v975_v55 = vld [vmem:[#allocation9 + $0x40] sm:$0xff]  ;;  %v1063_v56 = vld [vmem:[#allocation9 + $0xb0] sm:$0xff] }
  0x74   : > { %v1152_v59 = vld [vmem:[#allocation9 + $0x58] sm:$0xff]  ;;  %v1240_v60 = vld [vmem:[#allocation9 + $0xc8] sm:$0xff]  ;;  %v1151_v63 = vld [vmem:[#allocation9 + $0x50] sm:$0xff] }
  0x75   : > { %v286_v27 = vld [vmem:[#allocation2 + $0x1] sm:$0xff]  ;;  %v1239_v0 = vld [vmem:[#allocation9 + $0xc0] sm:$0xff]  ;;  %v1328_v3 = vld [vmem:[#allocation9 + $0x68] sm:$0xff] }
  0x76   : > { %v277_v28 = vld [vmem:[#allocation2] sm:$0xff]  ;;  %1747 = vmatprep.mubr.msk.f32.mxu0 %vm270_vm3, %v286_v27  ;;  %v287_v30 = vld [vmem:[#allocation2 + $0x9] sm:$0xff]  ;;  %v281_v34 = vld [vmem:[#allocation2 + $0x18] sm:$0xff] }
  0x77   : > { %1754 = vmatprep.mubr.msk.f32.mxu1 %vm270_vm3, %v277_v28  ;;  %v278_v31 = vld [vmem:[#allocation2 + $0x8] sm:$0xff]  ;;  %1748 = vmatmul.mubr.msk.f32.vlgmr.msra.gmra.mxu0 %vm270_vm3, %v287_v30  ;;  %v453_v33 = vld [vmem:[#allocation2 + $0x19] sm:$0xff]  ;;  %v1327_v7 = vld [vmem:[#allocation9 + $0x60] sm:$0xff] }
  0x78   : > { %1755 = vmatmul.mubr.msk.f32.vlgmr.msra.gmra.mxu1 %vm270_vm3, %v278_v31  ;;  %1758 = vmatpush3.msra.mxu0 %v457_v22  ;;  %v454_v37 = vld [vmem:[#allocation2 + $0x21] sm:$0xff]  ;;  %v621_v45 = vld [vmem:[#allocation2 + $0xa] sm:$0xff] }
  0x79   : > { %1765 = vmatpush3.msra.mxu1 %v285_v23  ;;  %1759 = vmatprep.subr.mxu0 %v456_v29  ;;  %v282_v38 = vld [vmem:[#allocation2 + $0x20] sm:$0xff]  ;;  %v797_v53 = vld [vmem:[#allocation2 + $0xb] sm:$0xff] }
  0x7a   : > { %1766 = vmatprep.subr.mxu1 %v284_v32  ;;  %1760 = vmatpush3.msra.mxu0 %v456_v29  ;;  %v620_v41 = vld [vmem:[#allocation2 + $0x2] sm:$0xff]  ;;  %v708_v42 = vld [vmem:[#allocation2 + $0x1a] sm:$0xff]  ;;  %v973_v61 = vld [vmem:[#allocation2 + $0xc] sm:$0xff] }
  0x7b   : > { %1767 = vmatpush3.msra.mxu1 %v284_v32  ;;  %1761 = vmatprep.mubr.msk.f32.mxu0 %vm270_vm3, %v453_v33  ;;  %v709_v46 = vld [vmem:[#allocation2 + $0x22] sm:$0xff]  ;;  %v1149_v5 = vld [vmem:[#allocation2 + $0xd] sm:$0xff] }
  0x7c   : > { %1768 = vmatprep.mubr.msk.f32.mxu1 %vm270_vm3, %v281_v34  ;;  %1771 = vmatprep.subr.mxu0 %v624_v35  ;;  %v796_v49 = vld [vmem:[#allocation2 + $0x3] sm:$0xff]  ;;  %v884_v50 = vld [vmem:[#allocation2 + $0x1b] sm:$0xff]  ;;  %v1325_v11 = vld [vmem:[#allocation2 + $0xe] sm:$0xff] }
  0x7d   : > { %1778 = vmatprep.subr.mxu1 %v712_v36  ;;  %1762 = vmatmul.mubr.msk.f32.vlgmr.msra.gmra.mxu0 %vm270_vm3, %v454_v37  ;;  %v885_v54 = vld [vmem:[#allocation2 + $0x23] sm:$0xff] }
  0x7e   : > { %1769 = vmatmul.mubr.msk.f32.vlgmr.msra.gmra.mxu1 %vm270_vm3, %v282_v38  ;;  %1772 = vmatpush3.msra.mxu0 %v624_v35  ;;  %v972_v57 = vld [vmem:[#allocation2 + $0x4] sm:$0xff]  ;;  %v1060_v58 = vld [vmem:[#allocation2 + $0x1c] sm:$0xff] }
  0x7f   : > { %1779 = vmatpush3.msra.mxu1 %v712_v36  ;;  %1773 = vmatprep.subr.mxu0 %v623_v39  ;;  %v1061_v62 = vld [vmem:[#allocation2 + $0x24] sm:$0xff] }
  0x80   : > { %1780 = vmatprep.subr.mxu1 %v711_v40  ;;  %1774 = vmatpush3.msra.mxu0 %v623_v39  ;;  %v1148_v1 = vld [vmem:[#allocation2 + $0x5] sm:$0xff]  ;;  %v1236_v2 = vld [vmem:[#allocation2 + $0x1d] sm:$0xff] }
  0x81   : > { %1781 = vmatpush3.msra.mxu1 %v711_v40  ;;  %1775 = vmatprep.mubr.msk.f32.mxu0 %vm270_vm3, %v620_v41  ;;  %v1416_v4 = vld [vmem:[#allocation9 + $0xd8] sm:$0xff]  ;;  %v1415_v8 = vld [vmem:[#allocation9 + $0xd0] sm:$0xff] }
  0x82   : > { %1782 = vmatprep.mubr.msk.f32.mxu1 %vm270_vm3, %v708_v42  ;;  %1785 = vmatprep.subr.mxu0 %v800_v43  ;;  %v1237_v6 = vld [vmem:[#allocation2 + $0x25] sm:$0xff] }
  0x83   : > { %1792 = vmatprep.subr.mxu1 %v888_v44  ;;  %1776 = vmatmul.mubr.msk.f32.vlgmr.msra.gmra.mxu0 %vm270_vm3, %v621_v45  ;;  %v1324_v9 = vld [vmem:[#allocation2 + $0x6] sm:$0xff]  ;;  %v1412_v10 = vld [vmem:[#allocation2 + $0x1e] sm:$0xff] }
  0x84   : > { %1783 = vmatmul.mubr.msk.f32.vlgmr.msra.gmra.mxu1 %vm270_vm3, %v709_v46  ;;  %1786 = vmatpush3.msra.mxu0 %v800_v43  ;;  %v1413_v12 = vld [vmem:[#allocation2 + $0x26] sm:$0xff] }
  0x85   : > { %1793 = vmatpush3.msra.mxu1 %v888_v44  ;;  %1787 = vmatprep.subr.mxu0 %v799_v47 }
  0x86   : > { %1794 = vmatprep.subr.mxu1 %v887_v48  ;;  %1788 = vmatpush3.msra.mxu0 %v799_v47 }
  0x87   : > { %1795 = vmatpush3.msra.mxu1 %v887_v48  ;;  %1789 = vmatprep.mubr.msk.f32.mxu0 %vm270_vm3, %v796_v49 }
  0x88   : > { %1796 = vmatprep.mubr.msk.f32.mxu1 %vm270_vm3, %v884_v50  ;;  %1799 = vmatprep.subr.mxu0 %v976_v51 }
  0x89   : > { %1806 = vmatprep.subr.mxu1 %v1064_v52  ;;  %1790 = vmatmul.mubr.msk.f32.vlgmr.msra.gmra.mxu0 %vm270_vm3, %v797_v53 }
  0x8a   : > { %1797 = vmatmul.mubr.msk.f32.vlgmr.msra.gmra.mxu1 %vm270_vm3, %v885_v54  ;;  %1800 = vmatpush3.msra.mxu0 %v976_v51 }
  0x8b   : > { %1807 = vmatpush3.msra.mxu1 %v1064_v52  ;;  %1801 = vmatprep.subr.mxu0 %v975_v55 }
  0x8c   : > { %1808 = vmatprep.subr.mxu1 %v1063_v56  ;;  %1802 = vmatpush3.msra.mxu0 %v975_v55 }
  0x8d   : > { %1809 = vmatpush3.msra.mxu1 %v1063_v56  ;;  %1803 = vmatprep.mubr.msk.f32.mxu0 %vm270_vm3, %v972_v57 }
  0x8e   : > { %1810 = vmatprep.mubr.msk.f32.mxu1 %vm270_vm3, %v1060_v58  ;;  %1813 = vmatprep.subr.mxu0 %v1152_v59 }
  0x8f   : > { %1820 = vmatprep.subr.mxu1 %v1240_v60  ;;  %1804 = vmatmul.mubr.msk.f32.vlgmr.msra.gmra.mxu0 %vm270_vm3, %v973_v61  ;;  %v1503_v61 = vstv %s2373_s20 }
  0x90   : > { %1811 = vmatmul.mubr.msk.f32.vlgmr.msra.gmra.mxu1 %vm270_vm3, %v1061_v62  ;;  %1814 = vmatpush3.msra.mxu0 %v1152_v59 }
  0x91   : > { %1821 = vmatpush3.msra.mxu1 %v1240_v60  ;;  %1815 = vmatprep.subr.mxu0 %v1151_v63 }
  0x92   : > { %1822 = vmatprep.subr.mxu1 %v1239_v0  ;;  %1816 = vmatpush3.msra.mxu0 %v1151_v63 }
  0x93   : > { %1823 = vmatpush3.msra.mxu1 %v1239_v0  ;;  %1817 = vmatprep.mubr.msk.f32.mxu0 %vm270_vm3, %v1148_v1 }
  0x94   : > { %1824 = vmatprep.mubr.msk.f32.mxu1 %vm270_vm3, %v1236_v2  ;;  %1827 = vmatprep.subr.mxu0 %v1328_v3 }
  0x95   : > { %1834 = vmatprep.subr.mxu1 %v1416_v4  ;;  %1818 = vmatmul.mubr.msk.f32.vlgmr.msra.gmra.mxu0 %vm270_vm3, %v1149_v5 }
  0x96   : > { %1825 = vmatmul.mubr.msk.f32.vlgmr.msra.gmra.mxu1 %vm270_vm3, %v1237_v6  ;;  %1828 = vmatpush3.msra.mxu0 %v1328_v3 }
  0x97   : > { %1835 = vmatpush3.msra.mxu1 %v1416_v4  ;;  %1829 = vmatprep.subr.mxu0 %v1327_v7 }
  0x98   : > { %1836 = vmatprep.subr.mxu1 %v1415_v8  ;;  %1830 = vmatpush3.msra.mxu0 %v1327_v7 }
  0x99   : > { %1837 = vmatpush3.msra.mxu1 %v1415_v8  ;;  %1831 = vmatprep.mubr.msk.f32.mxu0 %vm270_vm3, %v1324_v9 }
  0x9a   : > { %1838 = vmatprep.mubr.msk.f32.mxu1 %vm270_vm3, %v1412_v10  ;;  %1832 = vmatmul.mubr.msk.f32.vlgmr.msra.gmra.mxu0 %vm270_vm3, %v1325_v11 }
  0x9b   : > { %1839 = vmatmul.mubr.msk.f32.vlgmr.msra.gmra.mxu1 %vm270_vm3, %v1413_v12 }
 0x137   : > { %v1749_v13 = vpop.f32.mrf.mxu0 }
 0x138   : > { %v1756_v14 = vpop.f32.mrf.mxu1 }
 0x139   : > { %v363_v15 = vpop.f32.mrf.mxu0  ;;  %v450_v31 = vadd.f32 %v1756_v14, %v1749_v13 }
 0x13a   : > { %v444_v16 = vpop.f32.mrf.mxu1 }
 0x13b   : > { %v445_v35 = vadd.f32 %v444_v16, %v363_v15 }
 0x13d   : > { %v1763_v17 = vpop.f32.mrf.mxu0 }
 0x13e   : > { %v1770_v18 = vpop.f32.mrf.mxu1 }
 0x13f   : > { %v530_v19 = vpop.f32.mrf.mxu0  ;;  %v617_v32 = vadd.f32 %v1770_v18, %v1763_v17 }
 0x140   : > { %v611_v20 = vpop.f32.mrf.mxu1 }
 0x141   : > { %v612_v36 = vadd.f32 %v611_v20, %v530_v19 }
 0x143   : > { %v1777_v21 = vpop.f32.mrf.mxu0 }
 0x144   : > { %v1784_v22 = vpop.f32.mrf.mxu1  ;;  %v707_v37 = vadd.f32 %v1777_v21, %v450_v31 }
 0x145   : > { %v697_v23 = vpop.f32.mrf.mxu0  ;;  %v795_v38 = vadd.f32 %v1784_v22, %v617_v32 }
 0x146   : > { %v785_v24 = vpop.f32.mrf.mxu1  ;;  %v706_v39 = vadd.f32 %v697_v23, %v445_v35 }
 0x147   : > { %v794_v40 = vadd.f32 %v785_v24, %v612_v36 }
 0x149   : > { %v1791_v25 = vpop.f32.mrf.mxu0 }
 0x14a   : > { %v1798_v26 = vpop.f32.mrf.mxu1  ;;  %v883_v41 = vadd.f32 %v1791_v25, %v707_v37 }
 0x14b   : > { %v873_v27 = vpop.f32.mrf.mxu0  ;;  %v971_v42 = vadd.f32 %v1798_v26, %v795_v38 }
 0x14c   : > { %v961_v28 = vpop.f32.mrf.mxu1  ;;  %v882_v45 = vadd.f32 %v873_v27, %v706_v39 }
 0x14d   : > { %v970_v46 = vadd.f32 %v961_v28, %v794_v40 }
 0x14f   : > { %v1805_v29 = vpop.f32.mrf.mxu0 }
 0x150   : > { %v1812_v30 = vpop.f32.mrf.mxu1  ;;  %v1059_v47 = vadd.f32 %v1805_v29, %v883_v41 }
 0x151   : > { %v1049_v33 = vpop.f32.mrf.mxu0  ;;  %v1147_v48 = vadd.f32 %v1812_v30, %v971_v42 }
 0x152   : > { %v1137_v34 = vpop.f32.mrf.mxu1  ;;  %v1058_v51 = vadd.f32 %v1049_v33, %v882_v45 }
 0x153   : > { %v1146_v52 = vadd.f32 %v1137_v34, %v970_v46 }
 0x155   : > { %v1819_v43 = vpop.f32.mrf.mxu0 }
 0x156   : > { %v1826_v44 = vpop.f32.mrf.mxu1  ;;  %v1235_v53 = vadd.f32 %v1819_v43, %v1059_v47 }
 0x157   : > { %v1225_v49 = vpop.f32.mrf.mxu0  ;;  %v1323_v54 = vadd.f32 %v1826_v44, %v1147_v48 }
 0x158   : > { %v1313_v50 = vpop.f32.mrf.mxu1  ;;  %v1234_v57 = vadd.f32 %v1225_v49, %v1058_v51 }
 0x159   : > { %v1322_v58 = vadd.f32 %v1313_v50, %v1146_v52 }
 0x15a   : > { %v1833_v55 = vpop.f32.mrf.mxu0 }
 0x15b   : > { %v1840_v56 = vpop.f32.mrf.mxu1  ;;  %v1411_v59 = vadd.f32 %v1833_v55, %v1235_v53 }
 0x15c   : > { %v1499_v60 = vadd.f32 %v1840_v56, %v1323_v54  ;;  %v1401_v62 = vpop.f32.mrf.mxu0 }
 0x15d   : > { %v1489_v63 = vpop.f32.mrf.mxu1  ;;  %v1410_v1 = vadd.f32 %v1401_v62, %v1234_v57 }
 0x15e   : > { %v1501_v0 = vadd.f32 %v1499_v60, %v1411_v59  ;;  %v1498_v2 = vadd.f32 %v1489_v63, %v1322_v58 }
 0x160   : > { %v1505_v3 = vadd.f32 %v1503_v61, %v1501_v0  ;;  %v1500_v4 = vadd.f32 %v1498_v2, %v1410_v1 }
 0x162   : > { %v1679_v5 = vmul.f32 -1.442695, %v1505_v3  ;;  %v1504_v6 = vadd.f32 %v1503_v61, %v1500_v4 }
 0x164   : > { %1959 = vpow2.f32 %v1679_v5  ;;  %v1678_v7 = vmul.f32 -1.442695, %v1504_v6 }
 0x166   : > { %1961 = vpow2.f32 %v1678_v7 }
 0x171   : > { %v1960_v8 = vpop.eup %1959 }
 0x172   : > { %v1513_v9 = vadd.f32 1.0, %v1960_v8 }
 0x173   : > { %v1962_v10 = vpop.eup %1961 }
 0x174   : > { %1963 = vrcp.f32 %v1513_v9  ;;  %v1512_v11 = vadd.f32 1.0, %v1962_v10 }
 0x176   : > { %1965 = vrcp.f32 %v1512_v11 }
 0x181   : > { %v1964_v12 = vpop.eup %1963 }
 0x182   : > { %1519 = vst.msk [vmem:[%s2336_s28 + $0x8] sm:$0xff] %vm270_vm3, %v1964_v12 }
 0x183   : > { %v1966_v13 = vpop.eup %1965 }
 0x184   : > { %1518 = vst.msk [vmem:[%s2336_s28] sm:$0xff] %vm270_vm3, %v1966_v13 }
 0x185 PF: > { %s2480_s26 = sld [smem:[#allocation16_spill]]  ;;  %s1686_s4 = sshll.u32 %s2133_s2, 8 }
 0x186   : > { %s2481_s10 = sld [smem:[#allocation20_spill]]  ;;  %s1534_s1 = sshll.u32 %s2336_s28, 4  ;;  %s2387_s1 = int_to_ptr.vmem [resolvable:$true] %s1534_s1 }
 0x187   : > { %s2391_s14 = scalar_lea.sflag [#allocation8], %s219_s29  ;;  %s2021_s12 = scalar_lea.vmem %s2387_s1, 256 }
 0x188   : > { %p2022_p2 = scmp.ne.s32.totalorder %s2387_s1, %s2021_s12  ;;  %s2152_s2 = smov [#allocation11]  }
 0x189   : > { %s2025_s25 = sshll.u32 %s2152_s2, 4  ;;  %s2026_s25 = int_to_ptr.vmem [resolvable:$false] %s2025_s25 }
 0x18a   : > { %s2027_s3 = scalar_lea.vmem %s2026_s25, 512  ;;  %p2028_p8 = scmp.lt.s32.totalorder %s2387_s1, %s2026_s25 }
 0x18b   : > { %p2482_p4 = scmp.ne.s32.totalorder %s2480_s26, 0  ;;  %p2029_p7 = scmp.lt.s32.totalorder %s2027_s3, %s2021_s12 }
 0x18c   : > { %s2384_s17 = scalar_lea.hbm %s2481_s10, %s1686_s4 }
 0x18d   : > { %p2023_p5 = pnand %p2022_p2, %p2482_p4  ;;  %p2030_p9 = por %p2029_p7, %p2028_p8 }
 0x18f   : > { %p2024_p6 = pneg %p2023_p5 }
 0x191   : > { %p2031_p10 = pnand %p2030_p9, %p2024_p6 }
 0x193   : > { %2034 = shalt.err (!%p2031_p10)
}
 0x194   : > { %s2035_s5 = scalar_lea.hbm %s2384_s17, 256  ;;  %s2039_s24 = scalar_lea.hbm %s2481_s10, 512 }
 0x195   : > { %p2036_p12 = scmp.ne.s32.totalorder %s2384_s17, %s2035_s5  ;;  %p2040_p3 = scmp.lt.s32.totalorder %s2384_s17, %s2481_s10 }
 0x196   : > { %p2041_p1 = scmp.lt.s32.totalorder %s2039_s24, %s2035_s5 }
 0x197   : > { %p2037_p0 = pnand %p2036_p12, %p2482_p4 }
 0x198   : > { %p2042_p11 = por %p2041_p1, %p2040_p3 }
 0x199   : > { %p2038_p13 = pneg %p2037_p0 }
 0x19b   : > { %p2043_p2 = pnand %p2042_p11, %p2038_p13 }
 0x19d   : > { %2046 = shalt.err (!%p2043_p2)
}
 0x19e   : > { %s2153_s28 = smov 128   ;;  %s2154_s20 = smov 8  }
 0x19f   : > { %1847 = dma.vmem_to_hbm [thread:$0]  (%p2482_p4), %s2387_s1, 256, %s2384_s17, %s2391_s14, %s2153_s28, %s2153_s28, %s2154_s20  }
 0x1a0 PF: > { %s2483_s4 = sld [smem:[#allocation15_spill]]  ;;  %p1864_p5 = scmp.ge.s32.totalorder %s2145_s23, 2 }
 0x1a1   : > { %s2484_s7 = sld [smem:[#allocation17_spill]] }
 0x1a6   : > { %s1549_s27 = sand.u32 1, %s2483_s4  }
 0x1a7   : > { %p2485_p6 = scmp.ne.s32.totalorder %s2484_s7, 0  ;;  %s1550_s12 = scalar_lea.sflag [#allocation8], %s1549_s27 }
 0x1a9   : > { %p1858_p8 = pnand %p1864_p5, %p2485_p6 }
 0x1ab   : > { %p1859_p7 = pneg %p1858_p8 }
 0x1ad   : > { %2100 = dma.done.wait (%p1859_p7), %s1550_s12, 256  }
 0x1ae   : > { %2102 = vsyncadd (%p1859_p7), %s1550_s12, 4294967040  ;;  %s21_s23 = sadd.s32 1, %s2145_s23   ;;  %s2486_s26 = sld [smem:[#allocation18_spill]] }
 0x1af   : > { %p18_p9 = scmp.ge.s32.totalorder %s21_s23, 6   ;;  %s2487_s14 = smov %s2109_s15 }
 0x1b0   : > { %s2488_s15 = smov %s2113_s16  ;;  %s2489_s16 = smov %s2298_s8 }
 0x1b1   : > { %s2490_s17 = smov %s2121_s18  ;;  %s2491_s18 = smov %s2125_s19 }
 0x1b2   : > { %s2492_s19 = smov %s2301_s9  ;;  %s2493_s20 = smov %s2137_s21 }
 0x1b3   : > { %s2494_s2 = smov %s2141_s22  ;;  %s2496_s22 = smov %s2502_s13 }
 0x1b4   : > { %s2495_s21 = smov %s2486_s26  ;;  %20 = sbr.rel (!%p18_p9) target bundleno = 14 (0xe), region = 108 }
 0x1b9   :  { %1555 = vsyncpa [#allocation7], 1 }
 0x1ba   :  { %1557 = vsyncpa [#allocation7 + $0x1], 1 }
 0x1bb   :  { %1558 = vsyncpa [#allocation10], 1 }
 0x1bc   :  { %1559 = vsyncpa [#allocation8], 1 }
 0x1bd   :  { %1561 = vsyncpa [#allocation8 + $0x1], 1 }

</bundles_post_ra>
